<compile_context>
chip_gen: v5e
topology: v5e:2x2
jax: 0.10.0
libtpu: 0.0.40
codegen_flags: <defaults>
</compile_context>

<pallas_src>
import jax
import jax.numpy as jnp
from jax import lax
from jax.experimental import pallas as pl
from jax.experimental.pallas import tpu as pltpu


# ----------------------------------------------------------------------------- #
# Kernel 1: stand-in for self.model(...)['pooler_output'], fused embedding gather.
#   For a tile of TN chunks:
#     counts[n, v] = sum_s mask[n, s] * (ids[n, s] == v)        (weighted bag-of-words)
#     mean[n, :]   = (counts[n, :] / num_valid[n]) @ embed      (== masked mean of embeddings)
#     pooled       = tanh(mean @ Wp + bp)
# ----------------------------------------------------------------------------- #
def encoder_pool_kernel(ids_ref, mask_ref, embed_ref, wp_ref, bp_ref, out_ref):
    # ids_ref/mask_ref: (TN, S)   embed_ref: (V, H) bf16   wp_ref: (H, H) bf16
    # bp_ref: (1, H) f32          out_ref: (TN, H) bf16
    TN, S = ids_ref.shape
    V, _ = embed_ref.shape

    ids = ids_ref[...]                                    # (TN, S) int32
    m = mask_ref[...]                                     # (TN, S) f32

    # Weighted one-hot counts; vocab on sublanes, tokens stay on lanes (cheap broadcasts).
    vocab_iota = lax.broadcasted_iota(jnp.int32, (TN, V, S), 1)
    hit = ids[:, None, :] == vocab_iota                   # (TN, V, S) bool
    w_counts = jnp.sum(jnp.where(hit, m[:, None, :], 0.0), axis=2)   # (TN, V)

    cnt = jnp.maximum(jnp.sum(m, axis=1, keepdims=True), 1.0)        # (TN, 1)
    mean_w = w_counts * pl.reciprocal(cnt, approx=True)               # (TN, V)

    mean = jnp.dot(mean_w.astype(jnp.bfloat16), embed_ref[...],
                   preferred_element_type=jnp.float32)                # (TN, H)
    pooled = jnp.tanh(
        jnp.dot(mean.astype(jnp.bfloat16), wp_ref[...],
                preferred_element_type=jnp.float32) + bp_ref[...])
    out_ref[...] = pooled.astype(out_ref.dtype)


def encoder_pool(ids, mask, embed_bf16, wp_bf16, bp, *, tile_n=8):
    # TODO(synk): the bag-of-words gather keeps the whole (small) vocab table in VMEM;
    # a real large-vocab encoder would use a DMA gather (or simply be its own kernel stack).
    n_pad, S = ids.shape
    V, H = embed_bf16.shape
    assert n_pad % tile_n == 0
    maskf = mask.astype(jnp.float32)
    bp2 = bp.reshape(1, H).astype(jnp.float32)
    return pl.pallas_call(
        encoder_pool_kernel,
        out_shape=jax.ShapeDtypeStruct((n_pad, H), jnp.bfloat16),
        grid_spec=pltpu.PrefetchScalarGridSpec(
            num_scalar_prefetch=0,
            grid=(n_pad // tile_n,),
            in_specs=[
                pl.BlockSpec((tile_n, S), lambda i: (i, 0)),   # ids, lane-dense
                pl.BlockSpec((tile_n, S), lambda i: (i, 0)),   # mask, lane-dense
                pl.BlockSpec((V, H), lambda i: (0, 0)),        # embedding table (bf16)
                pl.BlockSpec((H, H), lambda i: (0, 0)),        # pooler dense (bf16)
                pl.BlockSpec((1, H), lambda i: (0, 0)),        # pooler bias
            ],
            out_specs=pl.BlockSpec((tile_n, H), lambda i: (i, 0)),
        ),
        compiler_params=pltpu.CompilerParams(
            dimension_semantics=("parallel",),
            vmem_limit_bytes=48 * 1024 * 1024,
        ),
    )(ids, maskf, embed_bf16, wp_bf16, bp2)


# ----------------------------------------------------------------------------- #
# Kernel 2: Hierarchical_Model head (the module's own hot path).
#   grid = chunk tiles (reduction axis). Per tile:
#     seg_t[j, b] = 1 iff chunk j belongs to document b          (0/1, no divides)
#     acc[b, :]  += seg_t^T @ pooled_tile                        (MXU, f32 accumulator)
#   Finalize: emb_pool = acc * (1/len)  ;  logits = emb_pool @ W_out + b_out
# ----------------------------------------------------------------------------- #
def seg_pool_classify_kernel(segid_ref, invlen_ref, pooled_ref, w_ref, b_ref,
                             out_ref, acc_ref):
    # segid_ref: (TK, 1) int32    invlen_ref: (B, 1) f32    pooled_ref: (TK, H) bf16
    # w_ref: (H, C) bf16          b_ref: (1, C) f32
    # out_ref: (B, C) f32         acc_ref: (B, H) f32 scratch
    k = pl.program_id(0)

    @pl.when(k == 0)
    def _init():
        acc_ref[...] = jnp.zeros_like(acc_ref)

    tk = segid_ref.shape[0]
    B = acc_ref.shape[0]
    doc_iota = lax.broadcasted_iota(jnp.int32, (tk, B), 1)
    seg_t = (segid_ref[...] == doc_iota).astype(jnp.bfloat16)      # (TK, B)
    # acc[b, h] += sum_j seg_t[j, b] * pooled[j, h]  (contract chunk axis)
    acc_ref[...] += lax.dot_general(
        seg_t, pooled_ref[...],
        dimension_numbers=(((0,), (0,)), ((), ())),
        preferred_element_type=jnp.float32)

    @pl.when(k == pl.num_programs(0) - 1)
    def _finalize():
        emb_pool = acc_ref[...] * invlen_ref[...]                  # (B, H) f32
        out_ref[...] = (
            jnp.dot(emb_pool.astype(jnp.bfloat16), w_ref[...],
                    preferred_element_type=jnp.float32)
            + b_ref[...])


def hierarchical_head(pooled, seg_id, inv_len, w_out_bf16, b_out, *, tile_k=8):
    n_pad, H = pooled.shape
    B = inv_len.shape[0]
    C = w_out_bf16.shape[1]
    assert n_pad % tile_k == 0
    b2 = b_out.reshape(1, C).astype(jnp.float32)
    return pl.pallas_call(
        seg_pool_classify_kernel,
        out_shape=jax.ShapeDtypeStruct((B, C), jnp.float32),
        grid_spec=pltpu.PrefetchScalarGridSpec(
            num_scalar_prefetch=0,
            grid=(n_pad // tile_k,),
            in_specs=[
                pl.BlockSpec((tile_k, 1), lambda k: (k, 0)),   # per-chunk doc id
                pl.BlockSpec((B, 1), lambda k: (0, 0)),        # 1/len per doc (folded post-matmul)
                pl.BlockSpec((tile_k, H), lambda k: (k, 0)),   # pooled chunk stream (bf16)
                pl.BlockSpec((H, C), lambda k: (0, 0)),        # output Linear weight (bf16)
                pl.BlockSpec((1, C), lambda k: (0, 0)),        # output Linear bias
            ],
            out_specs=pl.BlockSpec((B, C), lambda k: (0, 0)),
            scratch_shapes=[pltpu.VMEM((B, H), jnp.float32)],
        ),
        compiler_params=pltpu.CompilerParams(
            dimension_semantics=("arbitrary",),                # chunk axis is a reduction
            vmem_limit_bytes=48 * 1024 * 1024,
        ),
    )(seg_id, inv_len, pooled, w_out_bf16, b2)


# ----------------------------------------------------------------------------- #
# Full forward (glue in plain JAX: padding, doc-id vector, dtype casts)
# ----------------------------------------------------------------------------- #
def hierarchical_model_forward(params, ids, mask, lengt, *, tile_chunks=8):
    N, _ = ids.shape
    B = int(lengt.shape[0])
    n_pad = int(pl.cdiv(N, tile_chunks)) * tile_chunks
    pad = n_pad - N
    ids_p = jnp.pad(ids, ((0, pad), (0, 0)))
    mask_p = jnp.pad(mask, ((0, pad), (0, 0)))

    embed_bf = params["embed"].astype(jnp.bfloat16)
    wp_bf = params["wp"].astype(jnp.bfloat16)
    pooled = encoder_pool(ids_p, mask_p, embed_bf, wp_bf, params["bp"],
                          tile_n=tile_chunks)                       # (n_pad, H) bf16

    # Per-chunk document id (padding rows -> -1, matches no document).
    seg_id = jnp.repeat(jnp.arange(B, dtype=jnp.int32), lengt, total_repeat_length=N)
    seg_id = jnp.pad(seg_id, (0, pad), constant_values=-1).reshape(n_pad, 1)
    inv_len = (1.0 / jnp.maximum(lengt.astype(jnp.float32), 1.0)).reshape(B, 1)

    w_out_bf = params["w_out"].astype(jnp.bfloat16)
    logits = hierarchical_head(pooled, seg_id, inv_len, w_out_bf, params["b_out"],
                               tile_k=tile_chunks)
    return logits


def reference_forward(params, ids, mask, lengt_list):
    emb = params["embed"][ids]                                      # (N, S, H) f32
    m = mask.astype(jnp.float32)[..., None]
    mean = (emb * m).sum(1) / jnp.maximum(m.sum(1), 1.0)
    pooled = jnp.tanh(mean @ params["wp"] + params["bp"])
    segs, start = [], 0
    for l in lengt_list:
        segs.append(pooled[start:start + l].mean(0))
        start += l
    emb_pool = jnp.stack(segs)
    return emb_pool @ params["w_out"] + params["b_out"]


if __name__ == "__main__":
    # 3 documents with 3/7/6 chunks -> 16 chunks (2 chunk tiles; document 1 spans both,
    # exercising the cross-tile accumulator). seq_len=8, hidden=32, classes=2, vocab=50.
    key = jax.random.PRNGKey(0)
    k_emb, k_wp, k_bp, k_wo, k_bo, k_ids, k_mask = jax.random.split(key, 7)

    VOCAB, S, H, C = 50, 8, 32, 2
    lengt_list = [3, 7, 6]
    N = sum(lengt_list)
    lengt = jnp.array(lengt_list, dtype=jnp.int32)

    params = {
        "embed": jax.random.normal(k_emb, (VOCAB, H), jnp.float32) * 0.1,
        "wp": jax.random.normal(k_wp, (H, H), jnp.float32) * 0.05,     # pooler dense
        "bp": jax.random.normal(k_bp, (H,), jnp.float32) * 0.01,
        "w_out": jax.random.normal(k_wo, (H, C), jnp.float32) * 0.05,  # nn.Linear(hidden, C)
        "b_out": jax.random.normal(k_bo, (C,), jnp.float32) * 0.01,
    }

    ids = jax.random.randint(k_ids, (N, S), 0, VOCAB, dtype=jnp.int32)
    mask = jax.random.bernoulli(k_mask, 0.8, (N, S)).astype(jnp.int32)
    mask = mask.at[:, 0].set(1)   # at least one valid token per chunk

    # TODO(synk): pooling_method='lstm' (packed LSTM over chunk sequences) and 'max'
    # branches are not implemented; this is the default 'mean' pooling path.
    logits = hierarchical_model_forward(params, ids, mask, lengt)
    logits = jax.block_until_ready(logits)

    ref = reference_forward(params, ids, mask, lengt_list)
    assert logits.shape == (len(lengt_list), C)
    # bf16 matmul inputs (f32 accumulation) -> slightly relaxed tolerance vs pure-f32 reference.
    assert jnp.allclose(logits, ref, atol=2e-2, rtol=2e-2), (logits, ref)

    print("KERNEL_OK")
</pallas_src>

<mosaic_0001>
module attributes {stable_mosaic.version = 11 : i64} {
  func.func @encoder_pool_kernel(%arg0: i32, %arg1: memref<8x8xi32, #tpu.memory_space<vmem>>, %arg2: memref<8x8xf32, #tpu.memory_space<vmem>>, %arg3: memref<50x32xbf16, #tpu.memory_space<vmem>>, %arg4: memref<32x32xbf16, #tpu.memory_space<vmem>>, %arg5: memref<1x32xf32, #tpu.memory_space<vmem>>, %arg6: memref<8x32xbf16, #tpu.memory_space<vmem>>) attributes {dimension_semantics = [#tpu.dimension_semantics<parallel>], iteration_bounds = array<i64: 2>, scalar_prefetch = 0 : i64, scratch_operands = 0 : i64, tpu.core_type = #tpu.core_type<tc>, window_params = [{transform_indices = @transform_0, window_bounds = array<i64: 8, 8>}, {transform_indices = @transform_1, window_bounds = array<i64: 8, 8>}, {pipeline_mode = #tpu.pipeline_mode<synchronous>, transform_indices = @transform_2, window_bounds = array<i64: 50, 32>}, {pipeline_mode = #tpu.pipeline_mode<synchronous>, transform_indices = @transform_3, window_bounds = array<i64: 32, 32>}, {pipeline_mode = #tpu.pipeline_mode<synchronous>, transform_indices = @transform_4, window_bounds = array<i64: 1, 32>}, {transform_indices = @transform_5, window_bounds = array<i64: 8, 32>}]} {
    %c0 = arith.constant 0 : index
    %c0_0 = arith.constant 0 : index
    %0 = vector.load %arg1[%c0, %c0_0] : memref<8x8xi32, #tpu.memory_space<vmem>>, vector<8x8xi32>
    %c0_1 = arith.constant 0 : index
    %c0_2 = arith.constant 0 : index
    %1 = vector.load %arg2[%c0_1, %c0_2] : memref<8x8xf32, #tpu.memory_space<vmem>>, vector<8x8xf32>
    %2 = tpu.iota {dimensions = array<i32: 1>} : vector<8x50x8xi32>
    %3 = vector.shape_cast %0 : vector<8x8xi32> to vector<8x1x8xi32>
    %4 = vector.broadcast %3 : vector<8x1x8xi32> to vector<8x50x8xi32>
    %5 = arith.cmpi eq, %4, %2 : vector<8x50x8xi32>
    %6 = vector.shape_cast %1 : vector<8x8xf32> to vector<8x1x8xf32>
    %cst = arith.constant 0.000000e+00 : f32
    %7 = vector.shape_cast %6 : vector<8x1x8xf32> to vector<8x1x8xf32>
    %8 = vector.broadcast %7 : vector<8x1x8xf32> to vector<8x50x8xf32>
    %9 = vector.broadcast %cst : f32 to vector<8x50x8xf32>
    %10 = arith.select %5, %8, %9 : vector<8x50x8xi1>, vector<8x50x8xf32>
    %cst_3 = arith.constant dense<0.000000e+00> : vector<8x50xf32>
    %11 = vector.multi_reduction <add>, %10, %cst_3 [2] : vector<8x50x8xf32> to vector<8x50xf32>
    %cst_4 = arith.constant dense<0.000000e+00> : vector<8xf32>
    %12 = vector.multi_reduction <add>, %1, %cst_4 [1] : vector<8x8xf32> to vector<8xf32>
    %13 = vector.shape_cast %12 : vector<8xf32> to vector<8x1xf32>
    %cst_5 = arith.constant 1.000000e+00 : f32
    %14 = vector.broadcast %cst_5 : f32 to vector<8x1xf32>
    %15 = arith.maximumf %13, %14 : vector<8x1xf32>
    %16 = tpu.reciprocal %15 {approx = true} : vector<8x1xf32> -> vector<8x1xf32>
    %17 = vector.broadcast %16 : vector<8x1xf32> to vector<8x50xf32>
    %18 = arith.mulf %11, %17 : vector<8x50xf32>
    %19 = arith.truncf %18 : vector<8x50xf32> to vector<8x50xbf16>
    %c0_6 = arith.constant 0 : index
    %c0_7 = arith.constant 0 : index
    %20 = vector.load %arg3[%c0_6, %c0_7] : memref<50x32xbf16, #tpu.memory_space<vmem>>, vector<50x32xbf16>
    %cst_8 = arith.constant dense<0.000000e+00> : vector<8x32xf32>
    %21 = tpu.matmul %19, %20, %cst_8 {dimension_numbers = #tpu.dot_dimension_numbers<[1], [0], [0], [1], [0, 0, 1, 1], [], []>} : vector<8x50xbf16>, vector<50x32xbf16>, vector<8x32xf32> -> vector<8x32xf32>
    %22 = arith.truncf %21 : vector<8x32xf32> to vector<8x32xbf16>
    %c0_9 = arith.constant 0 : index
    %c0_10 = arith.constant 0 : index
    %23 = vector.load %arg4[%c0_9, %c0_10] : memref<32x32xbf16, #tpu.memory_space<vmem>>, vector<32x32xbf16>
    %cst_11 = arith.constant dense<0.000000e+00> : vector<8x32xf32>
    %24 = tpu.matmul %22, %23, %cst_11 {dimension_numbers = #tpu.dot_dimension_numbers<[1], [0], [0], [1], [0, 0, 1, 1], [], []>} : vector<8x32xbf16>, vector<32x32xbf16>, vector<8x32xf32> -> vector<8x32xf32>
    %c0_12 = arith.constant 0 : index
    %c0_13 = arith.constant 0 : index
    %25 = vector.load %arg5[%c0_12, %c0_13] : memref<1x32xf32, #tpu.memory_space<vmem>>, vector<1x32xf32>
    %26 = vector.broadcast %25 : vector<1x32xf32> to vector<8x32xf32>
    %27 = arith.addf %24, %26 : vector<8x32xf32>
    %28 = math.tanh %27 : vector<8x32xf32>
    %29 = arith.truncf %28 : vector<8x32xf32> to vector<8x32xbf16>
    %c0_14 = arith.constant 0 : index
    %c0_15 = arith.constant 0 : index
    %30 = vector.load %arg6[%c0_14, %c0_15] : memref<8x32xbf16, #tpu.memory_space<vmem>>, vector<8x32xbf16>
    tpu.vector_store %arg6[%c0_14, %c0_15], %29 {strides = array<i32>} : memref<8x32xbf16, #tpu.memory_space<vmem>>, vector<8x32xbf16>,
    return
  }
  func.func @transform_0(%arg0: i32) -> (i32, i32) {
    %c0_i32 = arith.constant 0 : i32
    %c0_i32_0 = arith.constant 0 : i32
    return %arg0, %c0_i32 : i32, i32
  }
  func.func @transform_1(%arg0: i32) -> (i32, i32) {
    %c0_i32 = arith.constant 0 : i32
    %c0_i32_0 = arith.constant 0 : i32
    return %arg0, %c0_i32 : i32, i32
  }
  func.func @transform_2(%arg0: i32) -> (i32, i32) {
    %c0_i32 = arith.constant 0 : i32
    %c0_i32_0 = arith.constant 0 : i32
    %c0_i32_1 = arith.constant 0 : i32
    return %c0_i32, %c0_i32_0 : i32, i32
  }
  func.func @transform_3(%arg0: i32) -> (i32, i32) {
    %c0_i32 = arith.constant 0 : i32
    %c0_i32_0 = arith.constant 0 : i32
    %c0_i32_1 = arith.constant 0 : i32
    return %c0_i32, %c0_i32_0 : i32, i32
  }
  func.func @transform_4(%arg0: i32) -> (i32, i32) {
    %c0_i32 = arith.constant 0 : i32
    %c0_i32_0 = arith.constant 0 : i32
    %c0_i32_1 = arith.constant 0 : i32
    return %c0_i32, %c0_i32_0 : i32, i32
  }
  func.func @transform_5(%arg0: i32) -> (i32, i32) {
    %c0_i32 = arith.constant 0 : i32
    %c0_i32_0 = arith.constant 0 : i32
    return %arg0, %c0_i32 : i32, i32
  }
}

</mosaic_0001>

<bundles_post_ra>
// kernel: tpu_custom_call.1
= control target key start
LH: loop header
LB: loop body
LE: loop exit
PB: predicated region body
PF: predicated region fallthrough
CT: control target
= control target key end

     0   :  { %10 = vsyncpa [#allocation3], 0  ;;  %s2042_s0 = inlined_call_operand.vmem [shape: s32[16,8], index: 0, kind: input, shape index: {}]   ;;  %s2043_s1 = inlined_call_operand.vmem [shape: f32[16,8], index: 1, kind: input, shape index: {}]   ;;  %s2044_s2 = inlined_call_operand.vmem [shape: bf16[50,32], index: 2, kind: input, shape index: {}]   ;;  %s2045_s3 = inlined_call_operand.vmem [shape: bf16[32,32], index: 3, kind: input, shape index: {}]   ;;  %s2046_s4 = inlined_call_operand.vmem [shape: f32[1,32], index: 4, kind: input, shape index: {}]   ;;  %s2047_s5 = inlined_call_operand.hbm [shape: bf16[16,32], index: 5, kind: output, shape index: {}]  }
   0x1   :  { %12 = vsyncpa [#allocation3 + $0x1], 0  ;;  %s1427_s18 = smov 0   ;;  %s1429_s19 = smov 0  }
   0x2   :  { %s1431_s20 = smov 0   ;;  %s1433_s21 = smov 0  }
   0x3 LB: > { %s1448_s22 = sadd.s32 4294967295, %s1394_s21   ;;  %s1246_s23 = sadd.s32 4294967294, %s1394_s21   ;;  %s1394_s21 = sphi %s1433_s21, %s2053_s21   ;;  %s1390_s20 = sphi %s1431_s20, %s2052_s20   ;;  %s1386_s19 = sphi %s1429_s19, %s2051_s19   ;;  %s1382_s18 = sphi %s1427_s18, %s2050_s18  }
   0x4   : > { %s1452_s24 = sadd.s32 1, %s1394_s21   ;;  %s140_s25 = sadd.s32 1, %s1390_s20 }
   0x5   : > { %s137_s26 = ssub.s32 %s1394_s21, %s1452_s24  ;;  %p150_p0 = scmp.ne.s32.totalorder %s1390_s20, %s1386_s19 }
   0x6   : > { %p138_p1 = scmp.eq.s32.totalorder %s137_s26, 0  ;;  %p151_p2 = scmp.eq.s32.totalorder %s1448_s22, 1 }
   0x7   : > { %p156_p3 = scmp.ne.s32.totalorder %s1386_s19, %s1382_s18  ;;  %p157_p4 = scmp.eq.s32.totalorder %s1246_s23, 1 }
   0x8   : > { %s1463_s27 = scalar_select %p138_p1, %s1390_s20, %s140_s25  }
   0x9   : > { %p1465_p5 = por %p151_p2, %p150_p0  ;;  %p1469_p6 = por %p157_p4, %p156_p3 }
   0xa   : > { %p1249_p7 = scmp.ge.s32.totalorder %s1394_s21, 1  ;;  %p198_p8 = scmp.lt.s32.totalorder %s1394_s21, 3 }
   0xc   : > { %p199_p9 = pnand %p1249_p7, %p198_p8 }
   0xd   : > { %p229_p10 = scmp.lt.s32.totalorder (!%p199_p9), %s1448_s22, 1  ;;  %s226_s11 = sand.u32 (!%p199_p9), 1, %s1386_s19  }
   0xe   : > { %202 = sbr.rel (%p199_p9) target bundleno = 816 (0x330), region = 40  ;;  %s1276_s13 = sshll.u32 (!%p199_p9), %s1448_s22, 2 }
   0xf   : > { %s1170_s16 = scalar_lea.hbm (!%p199_p9), %s2047_s5, %s1276_s13  ;;  %s1160_s26 = scalar_lea.sflag (!%p199_p9), [#allocation3], %s226_s11 }
  0x10   : > { %s1174_s25 = sshll.u32 (!%p199_p9), %s1170_s16, 4  ;;  %s1352_s8 = scalar_lea.hbm (!%p199_p9), %s2047_s5, 8  ;;  %s1175_s25 = int_to_ptr.hbm [resolvable:$true] %s1174_s25 }
  0x13   : > { %v240_v0 = vlaneseq  ;;  %s230_s30 = scalar_select %p229_p10, %s1448_s22, 1  ;;  %vm399_vm0 = vcmask 64512   ;;  %vm418_vm10 = vcmask 58368  }
  0x15   : > { %v1478_v1 = vshrl.u32 %v240_v0, 7  ;;  %s1251_s6 = sshll.u32 %s230_s30, 3  ;;  %s1346_s30 = sshra.s32 %s1175_s25, 4  ;;  %s1347_s30 = int_to_ptr.hbm [resolvable:$true] %s1346_s30 }
  0x16   : > { %s232_s9 = scalar_lea.vmem %s2042_s0, %s1251_s6  ;;  %s236_s12 = scalar_lea.vmem %s2043_s1, %s1251_s6 }
  0x17   : > { %v1487_v2 = vadd.s32 32, %v1478_v1  ;;  %v1490_v3 = vadd.s32 16, %v1478_v1  ;;  %v1492_v4 = vld [vmem:[%s232_s9] sm:$0xff]  ;;  %v1499_v8 = vadd.s32 40, %v1478_v1  ;;  %v1502_v9 = vadd.s32 24, %v1478_v1  ;;  %s1348_s22 = scalar_lea.hbm %s1347_s30, 4  ;;  %p1353_p0 = scmp.lt.s32.totalorder %s1347_s30, %s2047_s5 }
  0x18   : > { %v1494_v5 = vld [vmem:[%s236_s12] sm:$0xff]  ;;  %v255_v6 = vperm.slane %v1492_v4, 0  ;;  %v1505_v10 = vadd.s32 8, %v1478_v1  ;;  %v248_v14 = vrot.slane %v1492_v4, 1  ;;  %v1519_v23 = vadd.s32 48, %v1478_v1  ;;  %s1250_s12 = sshll.u32 %s226_s11, 2  ;;  %p1349_p11 = scmp.ne.s32.totalorder %s1347_s30, %s1348_s22 }
  0x19   : > { %v327_v7 = vperm.slane %v1494_v5, 0  ;;  %v320_v20 = vrot.slane %v1494_v5, 1  ;;  %v249_v34 = vrot.slane %v1492_v4, 2  ;;  %v321_v37 = vrot.slane %v1494_v5, 2  ;;  %s228_s17 = scalar_lea.vmem [#allocation2], %s1250_s12  ;;  %p1354_p1 = scmp.lt.s32.totalorder %s1352_s8, %s1348_s22 }
  0x1a   : > { %vm267_vm1 = vcmp.eq.s32.totalorder %v255_v6, %v1487_v2  ;;  %vm265_vm2 = vcmp.eq.s32.totalorder %v255_v6, %v1490_v3  ;;  %vm263_vm3 = vcmp.eq.s32.totalorder %v255_v6, %v1478_v1  ;;  %vm268_vm4 = vcmp.eq.s32.totalorder %v255_v6, %v1499_v8  ;;  %s1172_s23 = sshll.u32 %s228_s17, 4  ;;  %p1350_p12 = pnand %p1349_p11, %p1465_p5  ;;  %s1173_s23 = int_to_ptr.vmem [resolvable:$true] %s1172_s23 }
  0x1b   : > { %v347_v11 = vsel %vm267_vm1, %v327_v7, 0.0  ;;  %v345_v12 = vsel %vm265_vm2, %v327_v7, 0.0  ;;  %v343_v13 = vsel %vm263_vm3, %v327_v7, 0.0  ;;  %vm266_vm5 = vcmp.eq.s32.totalorder %v255_v6, %v1502_v9  ;;  %p1355_p2 = por %p1354_p1, %p1353_p0 }
  0x1c   : > { %v412_v15 = vsel %vm399_vm0, %v347_v11, 0.0  ;;  %v406_v16 = vsel %vm399_vm0, %v345_v12, 0.0  ;;  %v400_v17 = vsel %vm399_vm0, %v343_v13, 0.0  ;;  %vm264_vm6 = vcmp.eq.s32.totalorder %v255_v6, %v1505_v10  ;;  %p1351_p13 = pneg %p1350_p12 }
  0x1d   : > { %413 = vadd.xlane.f32.xlu2 %v412_v15  ;;  %407 = vadd.xlane.f32.xlu1 %v406_v16  ;;  %v348_v18 = vsel %vm268_vm4, %v327_v7, 0.0  ;;  %v346_v19 = vsel %vm266_vm5, %v327_v7, 0.0  ;;  %v344_v21 = vsel %vm264_vm6, %v327_v7, 0.0  ;;  %v256_v22 = vperm.slane %v248_v14, 0 }
  0x1e   : > { %401 = vadd.xlane.f32.xlu0 %v400_v17  ;;  %v415_v24 = vsel %vm399_vm0, %v348_v18, 0.0  ;;  %v409_v25 = vsel %vm399_vm0, %v346_v19, 0.0  ;;  %v403_v26 = vsel %vm399_vm0, %v344_v21, 0.0  ;;  %v328_v27 = vperm.slane %v320_v20, 0  ;;  %p1356_p3 = pnand %p1355_p2, %p1351_p13 }
  0x1f   : > { %vm271_vm7 = vcmp.eq.s32.totalorder %v256_v22, %v1505_v10  ;;  %vm270_vm8 = vcmp.eq.s32.totalorder %v256_v22, %v1478_v1  ;;  %vm269_vm9 = vcmp.eq.s32.totalorder %v255_v6, %v1519_v23  ;;  %vm274_vm11 = vcmp.eq.s32.totalorder %v256_v22, %v1487_v2 }
  0x20   : > { %v351_v28 = vsel %vm271_vm7, %v328_v27, 0.0  ;;  %v350_v29 = vsel %vm270_vm8, %v328_v27, 0.0  ;;  %v349_v30 = vsel %vm269_vm9, %v327_v7, 0.0  ;;  %vm273_vm12 = vcmp.eq.s32.totalorder %v256_v22, %v1502_v9 }
  0x21   : > { %v425_v31 = vsel %vm399_vm0, %v351_v28, 0.0  ;;  %v422_v32 = vsel %vm399_vm0, %v350_v29, 0.0  ;;  %v419_v33 = vsel %vm418_vm10, %v349_v30, 0.0  ;;  %vm272_vm13 = vcmp.eq.s32.totalorder %v256_v22, %v1490_v3 }
  0x22   : > { %v354_v35 = vsel %vm274_vm11, %v328_v27, 0.0  ;;  %v353_v36 = vsel %vm273_vm12, %v328_v27, 0.0  ;;  %v352_v38 = vsel %vm272_vm13, %v328_v27, 0.0  ;;  %v257_v39 = vperm.slane %v249_v34, 0 }
  0x23   : > { %v434_v40 = vsel %vm399_vm0, %v354_v35, 0.0  ;;  %v431_v41 = vsel %vm399_vm0, %v353_v36, 0.0  ;;  %v428_v42 = vsel %vm399_vm0, %v352_v38, 0.0  ;;  %v329_v43 = vperm.slane %v321_v37, 0 }
  0x24   : > { %vm277_vm14 = vcmp.eq.s32.totalorder %v257_v39, %v1478_v1  ;;  %vm276_vm15 = vcmp.eq.s32.totalorder %v256_v22, %v1519_v23  ;;  %vm275_vm1 = vcmp.eq.s32.totalorder %v256_v22, %v1499_v8  ;;  %vm280_vm2 = vcmp.eq.s32.totalorder %v257_v39, %v1502_v9 }
  0x25   : > { %416 = vadd.xlane.f32.xlu2 %v415_v24  ;;  %410 = vadd.xlane.f32.xlu1 %v409_v25  ;;  %v357_v44 = vsel %vm277_vm14, %v329_v43, 0.0  ;;  %v356_v45 = vsel %vm276_vm15, %v328_v27, 0.0  ;;  %v355_v46 = vsel %vm275_vm1, %v328_v27, 0.0  ;;  %vm279_vm3 = vcmp.eq.s32.totalorder %v257_v39, %v1490_v3 }
  0x26   : > { %404 = vadd.xlane.f32.xlu0 %v403_v26  ;;  %v443_v47 = vsel %vm399_vm0, %v357_v44, 0.0  ;;  %v440_v48 = vsel %vm418_vm10, %v356_v45, 0.0  ;;  %v437_v49 = vsel %vm399_vm0, %v355_v46, 0.0  ;;  %vm278_vm4 = vcmp.eq.s32.totalorder %v257_v39, %v1505_v10 }
  0x27   : > { %v360_v50 = vsel %vm280_vm2, %v329_v43, 0.0  ;;  %v359_v51 = vsel %vm279_vm3, %v329_v43, 0.0  ;;  %v358_v52 = vsel %vm278_vm4, %v329_v43, 0.0  ;;  %vm283_vm5 = vcmp.eq.s32.totalorder %v257_v39, %v1519_v23 }
  0x28   : > { %v452_v53 = vsel %vm399_vm0, %v360_v50, 0.0  ;;  %v449_v54 = vsel %vm399_vm0, %v359_v51, 0.0  ;;  %v446_v55 = vsel %vm399_vm0, %v358_v52, 0.0  ;;  %vm282_vm6 = vcmp.eq.s32.totalorder %v257_v39, %v1499_v8 }
  0x29   : > { %v250_v56 = vrot.slane %v1492_v4, 3  ;;  %vm281_vm7 = vcmp.eq.s32.totalorder %v257_v39, %v1487_v2  ;;  %v363_v57 = vsel %vm283_vm5, %v329_v43, 0.0  ;;  %v362_v58 = vsel %vm282_vm6, %v329_v43, 0.0 }
  0x2a   : > { %v322_v59 = vrot.slane %v1494_v5, 3  ;;  %v361_v60 = vsel %vm281_vm7, %v329_v43, 0.0  ;;  %v461_v62 = vsel %vm418_vm10, %v363_v57, 0.0  ;;  %v458_v63 = vsel %vm399_vm0, %v362_v58, 0.0 }
  0x2b   : > { %v258_v61 = vperm.slane %v250_v56, 0  ;;  %v455_v6 = vsel %vm399_vm0, %v361_v60, 0.0  ;;  %v251_v17 = vrot.slane %v1492_v4, 4  ;;  %v323_v20 = vrot.slane %v1494_v5, 4 }
  0x2c   : > { %v330_v7 = vperm.slane %v322_v59, 0  ;;  %v252_v34 = vrot.slane %v1492_v4, 5  ;;  %v324_v37 = vrot.slane %v1494_v5, 5  ;;  %v253_v56 = vrot.slane %v1492_v4, 6 }
  0x2d   : > { %426 = vadd.xlane.f32.xlu2 %v425_v31  ;;  %423 = vadd.xlane.f32.xlu1 %v422_v32  ;;  %vm286_vm8 = vcmp.eq.s32.totalorder %v258_v61, %v1490_v3  ;;  %vm285_vm9 = vcmp.eq.s32.totalorder %v258_v61, %v1505_v10  ;;  %vm284_vm11 = vcmp.eq.s32.totalorder %v258_v61, %v1478_v1  ;;  %v259_v22 = vperm.slane %v251_v17, 0 }
  0x2e   : > { %420 = vadd.xlane.f32.xlu0 %v419_v33  ;;  %v366_v11 = vsel %vm286_vm8, %v330_v7, 0.0  ;;  %v365_v12 = vsel %vm285_vm9, %v330_v7, 0.0  ;;  %v364_v13 = vsel %vm284_vm11, %v330_v7, 0.0  ;;  %vm289_vm12 = vcmp.eq.s32.totalorder %v258_v61, %v1499_v8 }
  0x2f   : > { %v470_v14 = vsel %vm399_vm0, %v366_v11, 0.0  ;;  %v467_v15 = vsel %vm399_vm0, %v365_v12, 0.0  ;;  %v464_v16 = vsel %vm399_vm0, %v364_v13, 0.0  ;;  %vm288_vm13 = vcmp.eq.s32.totalorder %v258_v61, %v1487_v2 }
  0x30   : > { %vm287_vm14 = vcmp.eq.s32.totalorder %v258_v61, %v1502_v9  ;;  %v369_v18 = vsel %vm289_vm12, %v330_v7, 0.0  ;;  %v368_v19 = vsel %vm288_vm13, %v330_v7, 0.0  ;;  %v331_v27 = vperm.slane %v323_v20, 0 }
  0x31   : > { %v367_v21 = vsel %vm287_vm14, %v330_v7, 0.0  ;;  %v479_v24 = vsel %vm399_vm0, %v369_v18, 0.0  ;;  %v476_v25 = vsel %vm399_vm0, %v368_v19, 0.0  ;;  %vm292_vm15 = vcmp.eq.s32.totalorder %v259_v22, %v1505_v10 }
  0x32   : > { %v473_v26 = vsel %vm399_vm0, %v367_v21, 0.0  ;;  %vm291_vm1 = vcmp.eq.s32.totalorder %v259_v22, %v1478_v1  ;;  %vm290_vm2 = vcmp.eq.s32.totalorder %v258_v61, %v1519_v23  ;;  %v372_v28 = vsel %vm292_vm15, %v331_v27, 0.0 }
  0x33   : > { %v371_v29 = vsel %vm291_vm1, %v331_v27, 0.0  ;;  %v370_v30 = vsel %vm290_vm2, %v330_v7, 0.0  ;;  %v488_v31 = vsel %vm399_vm0, %v372_v28, 0.0  ;;  %vm295_vm3 = vcmp.eq.s32.totalorder %v259_v22, %v1487_v2 }
  0x34   : > { %v485_v32 = vsel %vm399_vm0, %v371_v29, 0.0  ;;  %v482_v33 = vsel %vm418_vm10, %v370_v30, 0.0  ;;  %vm294_vm4 = vcmp.eq.s32.totalorder %v259_v22, %v1502_v9  ;;  %vm293_vm5 = vcmp.eq.s32.totalorder %v259_v22, %v1490_v3 }
  0x35   : > { %435 = vadd.xlane.f32.xlu2 %v434_v40  ;;  %432 = vadd.xlane.f32.xlu1 %v431_v41  ;;  %v375_v35 = vsel %vm295_vm3, %v331_v27, 0.0  ;;  %v374_v36 = vsel %vm294_vm4, %v331_v27, 0.0  ;;  %v373_v38 = vsel %vm293_vm5, %v331_v27, 0.0  ;;  %v260_v39 = vperm.slane %v252_v34, 0 }
  0x36   : > { %429 = vadd.xlane.f32.xlu0 %v428_v42  ;;  %v497_v40 = vsel %vm399_vm0, %v375_v35, 0.0  ;;  %v494_v41 = vsel %vm399_vm0, %v374_v36, 0.0  ;;  %v491_v42 = vsel %vm399_vm0, %v373_v38, 0.0  ;;  %v332_v43 = vperm.slane %v324_v37, 0 }
  0x37   : > { %vm298_vm6 = vcmp.eq.s32.totalorder %v260_v39, %v1478_v1  ;;  %vm297_vm7 = vcmp.eq.s32.totalorder %v259_v22, %v1519_v23  ;;  %vm296_vm8 = vcmp.eq.s32.totalorder %v259_v22, %v1499_v8  ;;  %vm301_vm9 = vcmp.eq.s32.totalorder %v260_v39, %v1502_v9 }
  0x38   : > { %v378_v44 = vsel %vm298_vm6, %v332_v43, 0.0  ;;  %v377_v45 = vsel %vm297_vm7, %v331_v27, 0.0  ;;  %v376_v46 = vsel %vm296_vm8, %v331_v27, 0.0  ;;  %vm300_vm11 = vcmp.eq.s32.totalorder %v260_v39, %v1490_v3 }
  0x39   : > { %vm299_vm12 = vcmp.eq.s32.totalorder %v260_v39, %v1505_v10  ;;  %v381_v50 = vsel %vm301_vm9, %v332_v43, 0.0  ;;  %v380_v51 = vsel %vm300_vm11, %v332_v43, 0.0  ;;  %vm304_vm13 = vcmp.eq.s32.totalorder %v260_v39, %v1519_v23 }
  0x3a   : > { %v379_v52 = vsel %vm299_vm12, %v332_v43, 0.0  ;;  %vm303_vm14 = vcmp.eq.s32.totalorder %v260_v39, %v1499_v8  ;;  %vm302_vm15 = vcmp.eq.s32.totalorder %v260_v39, %v1487_v2  ;;  %v384_v57 = vsel %vm304_vm13, %v332_v43, 0.0 }
  0x3b   : > { %v383_v58 = vsel %vm303_vm14, %v332_v43, 0.0  ;;  %v325_v59 = vrot.slane %v1494_v5, 6  ;;  %v382_v60 = vsel %vm302_vm15, %v332_v43, 0.0  ;;  %v261_v61 = vperm.slane %v253_v56, 0 }
  0x3c   : > { %v254_v17 = vrot.slane %v1492_v4, 7  ;;  %v326_v19 = vrot.slane %v1494_v5, 7 }
  0x3d   : > { %444 = vadd.xlane.f32.xlu2 %v443_v47  ;;  %441 = vadd.xlane.f32.xlu1 %v440_v48  ;;  %v506_v47 = vsel %vm399_vm0, %v378_v44, 0.0  ;;  %v503_v48 = vsel %vm418_vm10, %v377_v45, 0.0  ;;  %v333_v7 = vperm.slane %v325_v59, 0  ;;  %vm307_vm1 = vcmp.eq.s32.totalorder %v261_v61, %v1490_v3 }
  0x3e   : > { %438 = vadd.xlane.f32.xlu0 %v437_v49  ;;  %v500_v49 = vsel %vm399_vm0, %v376_v46, 0.0  ;;  %vm306_vm2 = vcmp.eq.s32.totalorder %v261_v61, %v1505_v10  ;;  %vm305_vm3 = vcmp.eq.s32.totalorder %v261_v61, %v1478_v1  ;;  %vm309_vm4 = vcmp.eq.s32.totalorder %v261_v61, %v1487_v2 }
  0x3f   : > { %v387_v11 = vsel %vm307_vm1, %v333_v7, 0.0  ;;  %v386_v12 = vsel %vm306_vm2, %v333_v7, 0.0  ;;  %v385_v13 = vsel %vm305_vm3, %v333_v7, 0.0  ;;  %vm308_vm5 = vcmp.eq.s32.totalorder %v261_v61, %v1502_v9 }
  0x40   : > { %v389_v18 = vsel %vm309_vm4, %v333_v7, 0.0  ;;  %v388_v21 = vsel %vm308_vm5, %v333_v7, 0.0  ;;  %v262_v22 = vperm.slane %v254_v17, 0  ;;  %v334_v4 = vperm.slane %v326_v19, 0 }
  0x41   : > { %vm311_vm7 = vcmp.eq.s32.totalorder %v261_v61, %v1519_v23  ;;  %vm310_vm8 = vcmp.eq.s32.totalorder %v261_v61, %v1499_v8  ;;  %vm955_vm1 = vcmask 261312   ;;  %vm959_vm2 = vcmask 326912  }
  0x42   : > { %vm312_vm6 = vcmp.eq.s32.totalorder %v262_v22, %v1478_v1  ;;  %v391_v28 = vsel %vm311_vm7, %v333_v7, 0.0  ;;  %v390_v30 = vsel %vm310_vm8, %v333_v7, 0.0  ;;  %vm315_vm9 = vcmp.eq.s32.totalorder %v262_v22, %v1502_v9 }
  0x43   : > { %v392_v27 = vsel %vm312_vm6, %v334_v4, 0.0  ;;  %vm314_vm11 = vcmp.eq.s32.totalorder %v262_v22, %v1490_v3  ;;  %vm313_vm12 = vcmp.eq.s32.totalorder %v262_v22, %v1505_v10  ;;  %v395_v1 = vsel %vm315_vm9, %v334_v4, 0.0 }
  0x44   : > { %v393_v36 = vsel %vm313_vm12, %v334_v4, 0.0  ;;  %v557_v37 = vsel %vm399_vm0, %v395_v1, 0.0  ;;  %vm318_vm13 = vcmp.eq.s32.totalorder %v262_v22, %v1519_v23  ;;  %vm317_vm14 = vcmp.eq.s32.totalorder %v262_v22, %v1499_v8 }
  0x45   : > { %453 = vadd.xlane.f32.xlu2 %v452_v53  ;;  %450 = vadd.xlane.f32.xlu1 %v449_v54  ;;  %v515_v53 = vsel %vm399_vm0, %v381_v50, 0.0  ;;  %v512_v54 = vsel %vm399_vm0, %v380_v51, 0.0  ;;  %v551_v9 = vsel %vm399_vm0, %v393_v36, 0.0  ;;  %vm316_vm15 = vcmp.eq.s32.totalorder %v262_v22, %v1487_v2 }
  0x46   : > { %447 = vadd.xlane.f32.xlu0 %v446_v55  ;;  %v509_v55 = vsel %vm399_vm0, %v379_v52, 0.0  ;;  %v398_v3 = vsel %vm318_vm13, %v334_v4, 0.0  ;;  %v397_v10 = vsel %vm317_vm14, %v334_v4, 0.0  ;;  %vm963_vm3 = vcmask 392512  }
  0x47   : > { %v563_v43 = vsel %vm399_vm0, %v397_v10, 0.0  ;;  %vm967_vm4 = vcmask 458112   ;;  %vm1060_vm5 = vcmask 1041409   ;;  %vm1062_vm6 = vcmask 1042434  }
  0x48   : > { %vm1064_vm7 = vcmask 1043459   ;;  %vm1100_vm8 = vcmask 1040384   ;;  %vm1066_vm9 = vcmask 1044484   ;;  %vm1070_vm12 = vcmask 1046534  }
  0x49   : > { %vm1072_vm13 = vcmask 1047559   ;;  %vm1096_vm14 = vcmask 408576  }
  0x4d   : > { %462 = vadd.xlane.f32.xlu2 %v461_v62  ;;  %459 = vadd.xlane.f32.xlu1 %v458_v63  ;;  %v524_v62 = vsel %vm418_vm10, %v384_v57, 0.0  ;;  %v521_v63 = vsel %vm399_vm0, %v383_v58, 0.0 }
  0x4e   : > { %456 = vadd.xlane.f32.xlu0 %v455_v6  ;;  %v518_v6 = vsel %vm399_vm0, %v382_v60, 0.0 }
  0x55   : > { %471 = vadd.xlane.f32.xlu2 %v470_v14  ;;  %468 = vadd.xlane.f32.xlu1 %v467_v15  ;;  %v533_v14 = vsel %vm399_vm0, %v387_v11, 0.0  ;;  %v530_v15 = vsel %vm399_vm0, %v386_v12, 0.0  ;;  %v1396_v12 = vmov 0  }
  0x56   : > { %465 = vadd.xlane.f32.xlu0 %v464_v16  ;;  %v527_v16 = vsel %vm399_vm0, %v385_v13, 0.0  ;;  %1326 = vset.pattern.permute.xlu2 %v1396_v12 }
  0x57   : > { %1325 = vset.pattern.permute.xlu1 %v1396_v12  ;;  %1324 = vset.pattern.permute.xlu0 %v1396_v12 }
  0x5d   : > { %480 = vadd.xlane.f32.xlu2 %v479_v24  ;;  %477 = vadd.xlane.f32.xlu1 %v476_v25  ;;  %v539_v24 = vsel %vm399_vm0, %v389_v18, 0.0  ;;  %v569_v25 = vsel %vm399_vm0, %v1494_v5, 0.0  ;;  %v545_v5 = vsel %vm418_vm10, %v391_v28, 0.0 }
  0x5e   : > { %474 = vadd.xlane.f32.xlu0 %v473_v26  ;;  %v536_v26 = vsel %vm399_vm0, %v388_v21, 0.0 }
  0x65   : > { %489 = vadd.xlane.f32.xlu2 %v488_v31  ;;  %486 = vadd.xlane.f32.xlu1 %v485_v32  ;;  %v548_v31 = vsel %vm399_vm0, %v392_v27, 0.0  ;;  %v542_v32 = vsel %vm399_vm0, %v390_v30, 0.0 }
  0x66   : > { %483 = vadd.xlane.f32.xlu0 %v482_v33  ;;  %v394_v33 = vsel %vm314_vm11, %v334_v4, 0.0  ;;  %vm1068_vm11 = vcmask 1045509  }
  0x67   : > { %v554_v38 = vsel %vm399_vm0, %v394_v33, 0.0 }
  0x6d   : > { %498 = vadd.xlane.f32.xlu2 %v497_v40  ;;  %495 = vadd.xlane.f32.xlu1 %v494_v41  ;;  %v396_v40 = vsel %vm316_vm15, %v334_v4, 0.0  ;;  %vm1138_vm15 = vcmask 261120  }
  0x6e   : > { %492 = vadd.xlane.f32.xlu0 %v491_v42  ;;  %v566_v42 = vsel %vm418_vm10, %v398_v3, 0.0  ;;  %v560_v44 = vsel %vm399_vm0, %v396_v40, 0.0  ;;  %vm947_vm0 = vcmask 130112   ;;  %vm951_vm10 = vcmask 195712  }
  0x75   : > { %507 = vadd.xlane.f32.xlu2 %v506_v47  ;;  %504 = vadd.xlane.f32.xlu1 %v503_v48 }
  0x76   : > { %501 = vadd.xlane.f32.xlu0 %v500_v49 }
  0x7d   : > { %516 = vadd.xlane.f32.xlu2 %v515_v53  ;;  %513 = vadd.xlane.f32.xlu1 %v512_v54 }
  0x7e   : > { %510 = vadd.xlane.f32.xlu0 %v509_v55 }
  0x85   : > { %525 = vadd.xlane.f32.xlu2 %v524_v62  ;;  %522 = vadd.xlane.f32.xlu1 %v521_v63 }
  0x86   : > { %519 = vadd.xlane.f32.xlu0 %v518_v6 }
  0x8d   : > { %534 = vadd.xlane.f32.xlu2 %v533_v14  ;;  %531 = vadd.xlane.f32.xlu1 %v530_v15 }
  0x8e   : > { %528 = vadd.xlane.f32.xlu0 %v527_v16 }
  0x90   : > { %v1616_v20 = vpop.xlane.xlu1 %407  ;;  %v1654_v45 = vpop.xlane.xlu2 %413 }
  0x91   : > { %v1633_v34 = vpop.xlane.xlu0 %401 }
  0x95   : > { %540 = vadd.xlane.f32.xlu2 %v539_v24  ;;  %570 = vadd.xlane.f32.xlu1 %v569_v25 }
  0x96   : > { %537 = vadd.xlane.f32.xlu0 %v536_v26 }
  0x98   : > { %v1625_v29 = vpop.xlane.xlu1 %410  ;;  %v1658_v48 = vpop.xlane.xlu2 %416 }
  0x99   : > { %v405_v41 = vpop.xlane.xlu0 %404 }
  0x9d   : > { %549 = vadd.xlane.f32.xlu2 %v548_v31  ;;  %546 = vadd.xlane.f32.xlu1 %v545_v5 }
  0x9e   : > { %543 = vadd.xlane.f32.xlu0 %v542_v32 }
  0xa0   : > { %v1635_v35 = vpop.xlane.xlu1 %423  ;;  %v427_v51 = vpop.xlane.xlu2 %426 }
  0xa1   : > { %v1650_v23 = vpop.xlane.xlu0 %420 }
  0xa5   : > { %558 = vadd.xlane.f32.xlu2 %v557_v37  ;;  %555 = vadd.xlane.f32.xlu1 %v554_v38 }
  0xa6   : > { %552 = vadd.xlane.f32.xlu0 %v551_v9 }
  0xa8   : > { %v1643_v39 = vpop.xlane.xlu1 %432  ;;  %v1666_v54 = vpop.xlane.xlu2 %435 }
  0xa9   : > { %v430_v46 = vpop.xlane.xlu0 %429 }
  0xad   : > { %567 = vadd.xlane.f32.xlu2 %v566_v42  ;;  %564 = vadd.xlane.f32.xlu1 %v563_v43 }
  0xae   : > { %561 = vadd.xlane.f32.xlu0 %v560_v44 }
  0xb0   : > { %v1648_v8 = vpop.xlane.xlu1 %441  ;;  %v445_v58 = vpop.xlane.xlu2 %444 }
  0xb1   : > { %v1660_v49 = vpop.xlane.xlu0 %438 }
  0xb8   : > { %v1652_v2 = vpop.xlane.xlu1 %450  ;;  %v454_v61 = vpop.xlane.xlu2 %453 }
  0xb9   : > { %v448_v53 = vpop.xlane.xlu0 %447 }
  0xc0   : > { %v1656_v47 = vpop.xlane.xlu1 %459  ;;  %v1682_v6 = vpop.xlane.xlu2 %462 }
  0xc1   : > { %v1670_v56 = vpop.xlane.xlu0 %456 }
  0xc8   : > { %v1662_v50 = vpop.xlane.xlu1 %468  ;;  %v1688_v13 = vpop.xlane.xlu2 %471 }
  0xc9   : > { %v1674_v59 = vpop.xlane.xlu0 %465 }
  0xd0   : > { %v1664_v52 = vpop.xlane.xlu1 %477  ;;  %v1692_v17 = vpop.xlane.xlu2 %480 }
  0xd1   : > { %v1678_v62 = vpop.xlane.xlu0 %474 }
  0xd8   : > { %v1668_v55 = vpop.xlane.xlu1 %486  ;;  %v1701_v24 = vpop.xlane.xlu2 %489 }
  0xd9   : > { %v1686_v11 = vpop.xlane.xlu0 %483 }
  0xe0   : > { %v1672_v57 = vpop.xlane.xlu1 %495  ;;  %v1723_v38 = vpop.xlane.xlu2 %498 }
  0xe1   : > { %v1690_v15 = vpop.xlane.xlu0 %492 }
  0xe8   : > { %v1676_v60 = vpop.xlane.xlu1 %504  ;;  %v508_v12 = vpop.xlane.xlu2 %507 }
  0xe9   : > { %v1694_v19 = vpop.xlane.xlu0 %501 }
  0xf0   : > { %v1680_v63 = vpop.xlane.xlu1 %513 }
  0xf1   : > { %v1716_v32 = vpop.xlane.xlu0 %510 }
  0xf8   : > { %v1684_v7 = vpop.xlane.xlu1 %522 }
  0xf9   : > { %v1728_v42 = vpop.xlane.xlu0 %519 }
 0x100   : > { %v532_v14 = vpop.xlane.xlu1 %531 }
 0x108   : > { %v571_v16 = vpop.xlane.xlu1 %570 }
 0x109   : > { %v572_v18 = vmax.f32 %v571_v16, 1.0 }
 0x10b   : > { %1328 = vrcp.f32 %v572_v18 }
 0x111   : > { %v1696_v21 = vpop.eup %1328 }
 0x112   : > { %v1699_v22 = vperm.slane %v1696_v21, 0  ;;  %v1704_v25 = vperm.slane %v1696_v21, 1  ;;  %v1714_v30 = vperm.slane %v1696_v21, 2  ;;  %v1734_v16 = vperm.slane %v1696_v21, 6 }
 0x114   : > { %v593_v26 = vmul.f32 %v1699_v22, %v1616_v20  ;;  %v594_v4 = vmul.f32 %v1699_v22, %v1625_v29  ;;  %v591_v27 = vmul.f32 %v1699_v22, %v1633_v34  ;;  %v592_v28 = vmul.f32 %v1699_v22, %v405_v41 }
 0x115   : > { %v598_v20 = vmul.f32 %v1704_v25, %v1635_v35  ;;  %v599_v36 = vmul.f32 %v1704_v25, %v427_v51  ;;  %v605_v37 = vmul.f32 %v1714_v30, %v445_v58  ;;  %v606_v34 = vmul.f32 %v1714_v30, %v448_v53 }
 0x116   : > { %v648_v31 = vpack.c.bf16 %v594_v4, %v593_v26  ;;  %v647_v5 = vpack.c.bf16 %v592_v28, %v591_v27  ;;  %v600_v41 = vmul.f32 %v1704_v25, %v430_v46  ;;  %v601_v35 = vmul.f32 %v1704_v25, %v1643_v39 }
 0x117   : > { %v651_v9 = vpack.c.bf16 %v599_v36, %v598_v20  ;;  %v655_v3 = vpack.c.bf16 %v606_v34, %v605_v37  ;;  %v607_v44 = vmul.f32 %v1714_v30, %v1652_v2  ;;  %v608_v51 = vmul.f32 %v1714_v30, %v454_v61  ;;  %v529_v61 = vpop.xlane.xlu0 %528 }
 0x118   : > { %v720_v1 = vunpack.c.l.b16 %v648_v31  ;;  %v719_v33 = vunpack.c.h.b16 %v647_v5  ;;  %v718_v29 = vunpack.c.l.b16 %v647_v5  ;;  %v652_v53 = vpack.c.bf16 %v601_v35, %v600_v41 }
 0x119   : > { %v725_v10 = vunpack.c.l.b16 %v651_v9  ;;  %v726_v40 = vunpack.c.h.b16 %v651_v9  ;;  %v733_v43 = vunpack.c.h.b16 %v655_v3  ;;  %v656_v58 = vpack.c.bf16 %v608_v51, %v607_v44 }
 0x11a   : > { %781 = vperm.xlu2 %1326, %v720_v1   ;;  %778 = vperm.xlu1 %1325, %v719_v33   ;;  %v727_v46 = vunpack.c.l.b16 %v652_v53  ;;  %v732_v18 = vunpack.c.l.b16 %v655_v3  ;;  %v595_v26 = vmul.f32 %v1699_v22, %v1654_v45  ;;  %v596_v2 = vmul.f32 %v1699_v22, %v1658_v48  ;;  %v1751_v33 = vpop.xlane.xlu2 %516 }
 0x11b   : > { %775 = vperm.xlu0 %1324, %v718_v29   ;;  %v734_v39 = vunpack.c.l.b16 %v656_v58  ;;  %v1742_v4 = vmul.f32 %v1714_v30, %v1682_v6  ;;  %v1745_v27 = vperm.slane %v1696_v21, 3  ;;  %v633_v28 = vmul.f32 %v1734_v16, %v529_v61 }
 0x11c   : > { %v634_v5 = vmul.f32 %v1734_v16, %v532_v14  ;;  %v649_v1 = vpack.c.bf16 %v596_v2, %v595_v26  ;;  %v721_v48 = vunpack.c.h.b16 %v648_v31  ;;  %v728_v20 = vunpack.c.h.b16 %v652_v53 }
 0x11d   : > { %v612_v36 = vmul.f32 %v1745_v27, %v1674_v59  ;;  %v613_v6 = vmul.f32 %v1745_v27, %v1662_v50  ;;  %v614_v37 = vmul.f32 %v1745_v27, %v1688_v13  ;;  %v615_v14 = vmul.f32 %v1745_v27, %v1678_v62 }
 0x11e   : > { %v1749_v45 = vpack.c.bf16 %v634_v5, %v633_v28  ;;  %v722_v29 = vunpack.c.l.b16 %v649_v1  ;;  %v602_v59 = vmul.f32 %v1704_v25, %v1666_v54  ;;  %v603_v50 = vmul.f32 %v1704_v25, %v1660_v49 }
 0x11f   : > { %v659_v34 = vpack.c.bf16 %v613_v6, %v612_v36  ;;  %v660_v9 = vpack.c.bf16 %v615_v14, %v614_v37  ;;  %v1768_v13 = vperm.slane %v1696_v21, 4  ;;  %v735_v35 = vunpack.c.h.b16 %v656_v58  ;;  %v538_v37 = vpop.xlane.xlu0 %537 }
 0x120   : > { %v653_v62 = vpack.c.bf16 %v603_v50, %v602_v59  ;;  %v723_v44 = vunpack.c.h.b16 %v649_v1  ;;  %v1777_v53 = vperm.slane %v1696_v21, 5  ;;  %v609_v58 = vmul.f32 %v1714_v30, %v1670_v56 }
 0x121   : > { %v739_v31 = vunpack.c.l.b16 %v659_v34  ;;  %v740_v3 = vunpack.c.h.b16 %v659_v34  ;;  %v620_v54 = vmul.f32 %v1768_v13, %v1701_v24  ;;  %v621_v56 = vmul.f32 %v1768_v13, %v1690_v15 }
 0x122   : > { %796 = vperm.xlu2 %1326, %v725_v10   ;;  %799 = vperm.xlu1 %1325, %v726_v40   ;;  %v741_v10 = vunpack.c.l.b16 %v660_v9  ;;  %v1765_v40 = vpop.xlane.xlu2 %525  ;;  %v729_v41 = vunpack.c.l.b16 %v653_v62  ;;  %v626_v24 = vmul.f32 %v1777_v53, %v508_v12  ;;  %v627_v26 = vmul.f32 %v1777_v53, %v1716_v32 }
 0x123   : > { %820 = vperm.xlu0 %1324, %v733_v43   ;;  %v619_v43 = vmul.f32 %v1768_v13, %v1668_v55  ;;  %v610_v55 = vmul.f32 %v1714_v30, %v1656_v47  ;;  %v730_v5 = vunpack.c.h.b16 %v653_v62  ;;  %v622_v47 = vmul.f32 %v1768_v13, %v1672_v57 }
 0x124   : > { %v667_v61 = vpack.c.bf16 %v627_v26, %v626_v24  ;;  %v597_v36 = vmul.f32 %v1699_v22, %v1650_v23  ;;  %v604_v6 = vmul.f32 %v1704_v25, %v1648_v8  ;;  %v628_v15 = vmul.f32 %v1777_v53, %v1680_v63 }
 0x125   : > { %v663_v51 = vpack.c.bf16 %v620_v54, %v619_v43  ;;  %v657_v2 = vpack.c.bf16 %v610_v55, %v609_v58  ;;  %v664_v32 = vpack.c.bf16 %v622_v47, %v621_v56  ;;  %v629_v57 = vmul.f32 %v1777_v53, %v1751_v33 }
 0x126   : > { %v754_v30 = vunpack.c.h.b16 %v667_v61  ;;  %v650_v14 = vpack.c.bf16 %v597_v36, %v597_v36  ;;  %v654_v34 = vpack.c.bf16 %v604_v6, %v604_v6  ;;  %v616_v23 = vmul.f32 %v1745_v27, %v1664_v52 }
 0x127   : > { %v736_v1 = vunpack.c.l.b16 %v657_v2  ;;  %v617_v8 = vmul.f32 %v1745_v27, %v1692_v17  ;;  %v1804_v25 = vpop.xlane.xlu0 %543  ;;  %v658_v59 = vpack.c.bf16 %v1742_v4, %v1742_v4  ;;  %v760_v43 = vunpack.c.l.b16 %v1749_v45 }
 0x128   : > { %v761_v54 = vunpack.c.h.b16 %v1749_v45  ;;  %v623_v4 = vmul.f32 %v1768_v13, %v1723_v38  ;;  %v636_v38 = vmul.f32 %v1734_v16, %v538_v37  ;;  %v1838_v6 = vand.u32 127, %v240_v0 }
 0x129   : > { %v661_v33 = vpack.c.bf16 %v617_v8, %v616_v23  ;;  %v738_v62 = vunpack.c.l.b16 %v658_v59  ;;  %v638_v8 = vmul.f32 %v1734_v16, %v1804_v25 }
 0x12a   : > { %802 = vperm.xlu2 %1326, %v727_v46   ;;  %817 = vperm.xlu1 %1325, %v732_v18   ;;  %v1774_v49 = vpop.xlane.xlu2 %534  ;;  %v746_v46 = vunpack.c.l.b16 %v663_v51  ;;  %v747_v18 = vunpack.c.h.b16 %v663_v51  ;;  %v1849_v0 = vadd.s32 4294967272, %v1838_v6 }
 0x12b   : > { %823 = vperm.xlu0 %1324, %v734_v39   ;;  %v742_v39 = vunpack.c.h.b16 %v660_v9  ;;  %v668_v9 = vpack.c.bf16 %v629_v57, %v628_v15  ;;  %v743_v50 = vunpack.c.l.b16 %v661_v33  ;;  %v635_v45 = vmul.f32 %v1734_v16, %v1774_v49 }
 0x12c   : > { %v618_v49 = vmul.f32 %v1745_v27, %v1686_v11 }
 0x12d   : > { %v755_v22 = vunpack.c.l.b16 %v668_v9 }
 0x12f   : > { %v553_v17 = vpop.xlane.xlu0 %552 }
 0x132   : > { %784 = vperm.xlu2 %1326, %v721_v48   ;;  %805 = vperm.xlu1 %1325, %v728_v20   ;;  %v1786_v28 = vpop.xlane.xlu2 %540  ;;  %v748_v48 = vunpack.c.l.b16 %v664_v32  ;;  %v753_v20 = vunpack.c.l.b16 %v667_v61 }
 0x133   : > { %787 = vperm.xlu0 %1324, %v722_v29   ;;  %v737_v29 = vunpack.c.h.b16 %v657_v2  ;;  %v631_v2 = vmul.f32 %v1777_v53, %v1684_v7  ;;  %v637_v23 = vmul.f32 %v1734_v16, %v1786_v28 }
 0x135   : > { %v673_v25 = vpack.c.bf16 %v638_v8, %v637_v23 }
 0x13a   : > { %838 = vperm.xlu2 %1326, %v739_v31   ;;  %841 = vperm.xlu1 %1325, %v740_v3   ;;  %v550_v12 = vpop.xlane.xlu2 %549  ;;  %v724_v31 = vunpack.c.l.b16 %v650_v14  ;;  %v731_v3 = vunpack.c.l.b16 %v654_v34 }
 0x13b   : > { %844 = vperm.xlu0 %1324, %v741_v10   ;;  %v749_v10 = vunpack.c.h.b16 %v664_v32 }
 0x142   : > { %808 = vperm.xlu2 %1326, %v729_v41   ;;  %826 = vperm.xlu1 %1325, %v735_v35   ;;  %v559_v63 = vpop.xlane.xlu2 %558  ;;  %v1811_v41 = vperm.slane %v1696_v21, 7  ;;  %v1813_v35 = vpop.xlane.xlu1 %546 }
 0x143   : > { %790 = vperm.xlu0 %1324, %v723_v44   ;;  %v624_v44 = vmul.f32 %v1768_v13, %v1694_v19  ;;  %v630_v19 = vmul.f32 %v1777_v53, %v1728_v42  ;;  %v625_v42 = vmul.f32 %v1768_v13, %v1676_v60  ;;  %v1843_v60 = vadd.s32 4294967288, %v1838_v6 }
 0x144   : > { %v641_v51 = vmul.f32 %v1811_v41, %v553_v17  ;;  %v640_v21 = vmul.f32 %v1811_v41, %v550_v12  ;;  %v1846_v13 = vadd.s32 4294967280, %v1838_v6 }
 0x145   : > { %v665_v58 = vpack.c.bf16 %v624_v44, %v623_v4  ;;  %v1830_v56 = vpack.c.bf16 %v631_v2, %v630_v19  ;;  %v666_v36 = vpack.c.bf16 %v625_v42, %v625_v42  ;;  %v1882_v42 = vadd.s32 4294967264, %v1838_v6 }
 0x146   : > { %v675_v55 = vpack.c.bf16 %v641_v51, %v640_v21 }
 0x147   : > { %v750_v24 = vunpack.c.l.b16 %v665_v58  ;;  %v757_v32 = vunpack.c.l.b16 %v1830_v56  ;;  %v751_v15 = vunpack.c.h.b16 %v665_v58  ;;  %v752_v57 = vunpack.c.l.b16 %v666_v36 }
 0x148   : > { %v768_v26 = vunpack.c.h.b16 %v675_v55 }
 0x14a   : > { %859 = vperm.xlu2 %1326, %v746_v46   ;;  %862 = vperm.xlu1 %1325, %v747_v18   ;;  %v1808_v52 = vpop.xlane.xlu2 %567  ;;  %v756_v46 = vunpack.c.h.b16 %v668_v9  ;;  %v556_v61 = vpop.xlane.xlu1 %555 }
 0x14b   : > { %847 = vperm.xlu0 %1324, %v742_v39   ;;  %v744_v39 = vunpack.c.h.b16 %v661_v33  ;;  %v642_v11 = vmul.f32 %v1811_v41, %v556_v61 }
 0x152   : > { %811 = vperm.xlu2 %1326, %v730_v5   ;;  %829 = vperm.xlu1 %1325, %v736_v1   ;;  %v672_v1 = vpack.c.bf16 %v636_v38, %v635_v45  ;;  %v565_v7 = vpop.xlane.xlu1 %564  ;;  %v646_v38 = vmul.f32 %v1811_v41, %v1808_v52  ;;  %v639_v52 = vmul.f32 %v1734_v16, %v1813_v35 }
 0x153   : > { %883 = vperm.xlu0 %1324, %v754_v30   ;;  %v767_v30 = vunpack.c.l.b16 %v675_v55  ;;  %v758_v55 = vunpack.c.h.b16 %v1830_v56 }
 0x154   : > { %v762_v47 = vunpack.c.l.b16 %v672_v1  ;;  %v763_v59 = vunpack.c.h.b16 %v672_v1 }
 0x15a   : > { %865 = vperm.xlu2 %1326, %v748_v48   ;;  %880 = vperm.xlu1 %1325, %v753_v20   ;;  %v662_v48 = vpack.c.bf16 %v618_v49, %v618_v49  ;;  %v562_v20 = vpop.xlane.xlu0 %561 }
 0x15b   : > { %832 = vperm.xlu0 %1324, %v737_v29   ;;  %v643_v29 = vmul.f32 %v1811_v41, %v559_v63 }
 0x15c   : > { %v745_v27 = vunpack.c.l.b16 %v662_v48 }
 0x15d   : > { %v676_v37 = vpack.c.bf16 %v643_v29, %v642_v11 }
 0x162   : > { %793 = vperm.xlu2 %1326, %v724_v31   ;;  %814 = vperm.xlu1 %1325, %v731_v3  }
 0x163   : > { %886 = vperm.xlu0 %1324, %v755_v22  }
 0x16a   : > { %850 = vperm.xlu2 %1326, %v743_v50   ;;  %868 = vperm.xlu1 %1325, %v749_v10   ;;  %v769_v50 = vunpack.c.l.b16 %v676_v37  ;;  %v644_v10 = vmul.f32 %v1811_v41, %v562_v20 }
 0x16b   : > { %835 = vperm.xlu0 %1324, %v738_v62   ;;  %v645_v62 = vmul.f32 %v1811_v41, %v565_v7  ;;  %v674_v7 = vpack.c.bf16 %v639_v52, %v639_v52 }
 0x16d   : > { %v677_v44 = vpack.c.bf16 %v645_v62, %v644_v10  ;;  %v766_v11 = vunpack.c.l.b16 %v674_v7 }
 0x172   : > { %901 = vperm.xlu2 %1326, %v760_v43   ;;  %904 = vperm.xlu1 %1325, %v761_v54   ;;  %v770_v43 = vunpack.c.h.b16 %v676_v37  ;;  %v1891_v37 = vadd.s32 4294967256, %v1838_v6 }
 0x173   : > { %889 = vperm.xlu0 %1324, %v756_v46  }
 0x174   : > { %v782_v18 = vpop.permute.xlu2 %781 }
 0x175   : > { %v950_v22 = vperm.slane %v782_v18, %v1846_v13 }
 0x17a   : > { %853 = vperm.xlu2 %1326, %v744_v39   ;;  %871 = vperm.xlu1 %1325, %v750_v24   ;;  %v764_v39 = vunpack.c.l.b16 %v673_v25  ;;  %v632_v24 = vmul.f32 %v1777_v53, %v1765_v40 }
 0x17b   : > { %925 = vperm.xlu0 %1324, %v768_v26   ;;  %v771_v26 = vunpack.c.l.b16 %v677_v44 }
 0x17c   : > { %v797_v5 = vpop.permute.xlu2 %796  ;;  %v670_v61 = vpack.c.bf16 %v632_v24, %v632_v24 }
 0x17d   : > { %v969_v51 = vperm.slane %v797_v5, %v1838_v6  ;;  %v678_v5 = vpack.c.bf16 %v646_v38, %v646_v38 }
 0x17e   : > { %v759_v41 = vunpack.c.l.b16 %v670_v61 }
 0x182   : > { %907 = vperm.xlu2 %1326, %v762_v47   ;;  %922 = vperm.xlu1 %1325, %v767_v30   ;;  %v765_v30 = vunpack.c.h.b16 %v673_v25  ;;  %v1905_v25 = vadd.s32 4294967248, %v1838_v6 }
 0x183   : > { %892 = vperm.xlu0 %1324, %v757_v32   ;;  %v773_v32 = vunpack.c.l.b16 %v678_v5 }
 0x184   : > { %v803_v12 = vpop.permute.xlu2 %802 }
 0x185   : > { %v972_v18 = vperm.slane %v803_v12, %v1846_v13 }
 0x18a   : > { %856 = vperm.xlu2 %1326, %v745_v27   ;;  %874 = vperm.xlu1 %1325, %v751_v15   ;;  %v772_v15 = vunpack.c.h.b16 %v677_v44 }
 0x18b   : > { %877 = vperm.xlu0 %1324, %v752_v57  }
 0x18c   : > { %v785_v14 = vpop.permute.xlu2 %784  ;;  %v779_v34 = vpop.permute.xlu1 %778 }
 0x18d   : > { %v776_v9 = vpop.permute.xlu0 %775  ;;  %v946_v31 = vperm.slane %v779_v34, %v1843_v60  ;;  %v954_v63 = vperm.slane %v785_v14, %v1849_v0 }
 0x18e   : > { %v944_v3 = vperm.slane %v776_v9, %v1838_v6 }
 0x190   : > { %v948_v33 = vsel %vm947_vm0, %v946_v31, %v944_v3 }
 0x191   : > { %v952_v17 = vsel %vm951_vm10, %v950_v22, %v948_v33 }
 0x192   : > { %910 = vperm.xlu2 %1326, %v763_v59   ;;  %928 = vperm.xlu1 %1325, %v769_v50   ;;  %v956_v28 = vsel %vm955_vm1, %v954_v63, %v952_v17 }
 0x193   : > { %931 = vperm.xlu0 %1324, %v770_v43  }
 0x194   : > { %v839_v54 = vpop.permute.xlu2 %838  ;;  %v800_v4 = vpop.permute.xlu1 %799 }
 0x195   : > { %v821_v46 = vpop.permute.xlu0 %820  ;;  %v970_v21 = vperm.slane %v800_v4, %v1843_v60  ;;  %v995_v9 = vperm.slane %v839_v54, %v1838_v6 }
 0x196   : > { %v983_v1 = vperm.slane %v821_v46, %v1843_v60 }
 0x197   : > { %v971_v58 = vsel %vm947_vm0, %v970_v21, %v969_v51 }
 0x198   : > { %v973_v45 = vsel %vm951_vm10, %v972_v18, %v971_v58 }
 0x19a   : > { %895 = vperm.xlu2 %1326, %v758_v55   ;;  %913 = vperm.xlu1 %1325, %v764_v39  }
 0x19b   : > { %934 = vperm.xlu0 %1324, %v771_v26  }
 0x19c   : > { %v809_v19 = vpop.permute.xlu2 %808  ;;  %v818_v2 = vpop.permute.xlu1 %817 }
 0x19d   : > { %v824_v56 = vpop.permute.xlu0 %823  ;;  %v982_v47 = vperm.slane %v818_v2, %v1838_v6  ;;  %v976_v16 = vperm.slane %v809_v19, %v1882_v42 }
 0x19e   : > { %v985_v40 = vperm.slane %v824_v56, %v1846_v13 }
 0x19f   : > { %v984_v53 = vsel %vm947_vm0, %v983_v1, %v982_v47 }
 0x1a0   : > { %v986_v49 = vsel %vm951_vm10, %v985_v40, %v984_v53 }
 0x1a2   : > { %898 = vperm.xlu2 %1326, %v759_v41   ;;  %916 = vperm.xlu1 %1325, %v765_v30  }
 0x1a3   : > { %940 = vperm.xlu0 %1324, %v773_v32  }
 0x1a4   : > { %v860_v12 = vpop.permute.xlu2 %859  ;;  %v806_v48 = vpop.permute.xlu1 %805 }
 0x1a5   : > { %v788_v20 = vpop.permute.xlu0 %787  ;;  %v974_v36 = vperm.slane %v806_v48, %v1849_v0  ;;  %v1008_v44 = vperm.slane %v860_v12, %v1838_v6 }
 0x1a6   : > { %v958_v35 = vperm.slane %v788_v20, %v1882_v42 }
 0x1a7   : > { %v975_v29 = vsel %vm955_vm1, %v974_v36, %v973_v45 }
 0x1a8   : > { %v960_v27 = vsel %vm959_vm2, %v958_v35, %v956_v28  ;;  %v977_v57 = vsel %vm959_vm2, %v976_v16, %v975_v29 }
 0x1aa   : > { %919 = vperm.xlu2 %1326, %v766_v11   ;;  %937 = vperm.xlu1 %1325, %v772_v15  }
 0x1ac   : > { %v812_v14 = vpop.permute.xlu2 %811  ;;  %v842_v34 = vpop.permute.xlu1 %841 }
 0x1ad   : > { %v978_v31 = vperm.slane %v812_v14, %v1891_v37  ;;  %v845_v3 = vpop.permute.xlu0 %844  ;;  %v996_v23 = vperm.slane %v842_v34, %v1843_v60 }
 0x1ae   : > { %v998_v8 = vperm.slane %v845_v3, %v1846_v13 }
 0x1af   : > { %v979_v22 = vsel %vm963_vm3, %v978_v31, %v977_v57  ;;  %v997_v63 = vsel %vm947_vm0, %v996_v23, %v995_v9 }
 0x1b0   : > { %v999_v33 = vsel %vm951_vm10, %v998_v8, %v997_v63 }
 0x1b4   : > { %v866_v59 = vpop.permute.xlu2 %865  ;;  %v827_v50 = vpop.permute.xlu1 %826 }
 0x1b5   : > { %v791_v10 = vpop.permute.xlu0 %790  ;;  %v987_v62 = vperm.slane %v827_v50, %v1849_v0  ;;  %v1011_v18 = vperm.slane %v866_v59, %v1846_v13 }
 0x1b6   : > { %v962_v17 = vperm.slane %v791_v10, %v1891_v37 }
 0x1b7   : > { %v988_v43 = vsel %vm955_vm1, %v987_v62, %v986_v49 }
 0x1b8   : > { %v964_v28 = vsel %vm963_vm3, %v962_v17, %v960_v27 }
 0x1bc   : > { %v794_v54 = vpop.permute.xlu2 %793  ;;  %v863_v4 = vpop.permute.xlu1 %862 }
 0x1bd   : > { %v966_v51 = vperm.slane %v794_v54, %v1905_v25  ;;  %v848_v46 = vpop.permute.xlu0 %847  ;;  %v1009_v21 = vperm.slane %v863_v4, %v1843_v60 }
 0x1be   : > { %v1000_v58 = vperm.slane %v848_v46, %v1849_v0 }
 0x1bf   : > { %v968_v55 = vsel %vm967_vm4, %v966_v51, %v964_v28  ;;  %v1010_v39 = vsel %vm947_vm0, %v1009_v21, %v1008_v44  ;;  %v685_v28 = vld [vmem:[%s2044_s2 + $0x18] sm:$0x1] }
 0x1c0   : > { %v1001_v24 = vsel %vm955_vm1, %v1000_v58, %v999_v33  ;;  %v1012_v45 = vsel %vm951_vm10, %v1011_v18, %v1010_v39  ;;  %v1088_v4 = vunpack.c.l.b16 %v685_v28 }
 0x1c2   : > { %v1092_v46 = vpack.c.b16 %v1088_v4, %v1088_v4 }
 0x1c4   : > { %v851_v38 = vpop.permute.xlu2 %850  ;;  %v830_v26 = vpop.permute.xlu1 %829 }
 0x1c5   : > { %v884_v19 = vpop.permute.xlu0 %883  ;;  %v989_v2 = vperm.slane %v830_v26, %v1882_v42  ;;  %v1002_v11 = vperm.slane %v851_v38, %v1882_v42 }
 0x1c6   : > { %v1022_v56 = vperm.slane %v884_v19, %v1843_v60 }
 0x1c7   : > { %v990_v61 = vsel %vm959_vm2, %v989_v2, %v988_v43  ;;  %v1003_v34 = vsel %vm959_vm2, %v1002_v11, %v1001_v24  ;;  %v1102_v2 = vsel %vm1100_vm8, %v1092_v46, 0  ;;  %v1327_v46 = vld [vmem:[%s2046_s4] ss:$0 sm:$0xff] }
 0x1c8   : > { %1108 = vmatpush.bf16.msra.mxu0 %v1102_v2 }
 0x1cc   : > { %v1918_v5 = vpop.permute.xlu2 %901  ;;  %v881_v1 = vpop.permute.xlu1 %880 }
 0x1cd   : > { %v833_v47 = vpop.permute.xlu0 %832  ;;  %v1021_v40 = vperm.slane %v881_v1, %v1838_v6 }
 0x1ce   : > { %v991_v53 = vperm.slane %v833_v47, %v1891_v37 }
 0x1cf   : > { %v1023_v52 = vsel %vm947_vm0, %v1022_v56, %v1021_v40 }
 0x1d0   : > { %v992_v41 = vsel %vm963_vm3, %v991_v53, %v990_v61 }
 0x1d4   : > { %v854_v30 = vpop.permute.xlu2 %853  ;;  %v815_v49 = vpop.permute.xlu1 %814 }
 0x1d5   : > { %v887_v32 = vpop.permute.xlu0 %886  ;;  %v980_v7 = vperm.slane %v815_v49, %v1905_v25  ;;  %v1004_v15 = vperm.slane %v854_v30, %v1891_v37 }
 0x1d6   : > { %v1024_v62 = vperm.slane %v887_v32, %v1846_v13  ;;  %v1283_v32 = vld [vmem:[%s2045_s3 + $0x8] sm:$0xff] }
 0x1d7   : > { %v981_v12 = vsel %vm967_vm4, %v980_v7, %v979_v22  ;;  %v1005_v3 = vsel %vm963_vm3, %v1004_v15, %v1003_v34  ;;  %v1279_v7 = vld [vmem:[%s2044_s2] sm:$0xff]  ;;  %1148 = vmatpush.bf16.msra.mxu1 %v1283_v32 }
 0x1d8   : > { %v1061_v48 = vsel %vm1060_vm5, %v981_v12, %v968_v55  ;;  %v1025_v51 = vsel %vm951_vm10, %v1024_v62, %v1023_v52 }
 0x1dc   : > { %v1927_v20 = vpop.permute.xlu2 %907  ;;  %v869_v36 = vpop.permute.xlu1 %868 }
 0x1dd   : > { %v836_v16 = vpop.permute.xlu0 %835  ;;  %v1013_v17 = vperm.slane %v869_v36, %v1849_v0  ;;  %v1037_v15 = vperm.slane %v1927_v20, %v1846_v13 }
 0x1de   : > { %v993_v35 = vperm.slane %v836_v16, %v1905_v25 }
 0x1df   : > { %v1014_v21 = vsel %vm955_vm1, %v1013_v17, %v1012_v45  ;;  %v1281_v45 = vld [vmem:[%s2044_s2 + $0x10] sm:$0xff] }
 0x1e0   : > { %v994_v29 = vsel %vm967_vm4, %v993_v35, %v992_v41  ;;  %1109 = vmatpush.bf16.msra.mxu0 %v1281_v45  ;;  %v1280_v41 = vld [vmem:[%s2044_s2 + $0x8] sm:$0xff]  ;;  %v1034_v35 = vperm.slane %v1918_v5, %v1838_v6 }
 0x1e1   : > { %v1063_v27 = vsel %vm1062_vm6, %v994_v29, %v1061_v48 }
 0x1e4   : > { %v857_v57 = vpop.permute.xlu2 %856  ;;  %v905_v14 = vpop.permute.xlu1 %904  ;;  %1110 = vmatpush.bf16.msra.mxu0 %v1280_v41 }
 0x1e5   : > { %v1006_v9 = vperm.slane %v857_v57, %v1905_v25  ;;  %v890_v31 = vpop.permute.xlu0 %889  ;;  %v1035_v36 = vperm.slane %v905_v14, %v1843_v60 }
 0x1e6   : > { %v1026_v43 = vperm.slane %v890_v31, %v1849_v0 }
 0x1e7   : > { %v1007_v23 = vsel %vm967_vm4, %v1006_v9, %v1005_v3  ;;  %v1036_v29 = vsel %vm947_vm0, %v1035_v36, %v1034_v35 }
 0x1e8   : > { %v1065_v8 = vsel %vm1064_vm7, %v1007_v23, %v1063_v27  ;;  %v1027_v18 = vsel %vm955_vm1, %v1026_v43, %v1025_v51  ;;  %1111 = vmatpush.bf16.msra.mxu0 %v1279_v7  ;;  %v1038_v31 = vsel %vm951_vm10, %v1037_v15, %v1036_v29 }
 0x1ec   : > { %v1937_v22 = vpop.permute.xlu2 %910  ;;  %v872_v63 = vpop.permute.xlu1 %871 }
 0x1ed   : > { %v1939_v33 = vpop.permute.xlu0 %925  ;;  %v1015_v44 = vperm.slane %v872_v63, %v1882_v42  ;;  %v1039_v11 = vperm.slane %v1937_v22, %v1849_v0 }
 0x1ee   : > { %v1048_v5 = vperm.slane %v1939_v33, %v1843_v60 }
 0x1ef   : > { %v1016_v61 = vsel %vm959_vm2, %v1015_v44, %v1014_v21  ;;  %v1040_v3 = vsel %vm955_vm1, %v1039_v11, %v1038_v31 }
 0x1f4   : > { %v896_v59 = vpop.permute.xlu2 %895  ;;  %v923_v50 = vpop.permute.xlu1 %922 }
 0x1f5   : > { %v893_v10 = vpop.permute.xlu0 %892  ;;  %v1030_v58 = vperm.slane %v896_v59, %v1891_v37  ;;  %v1047_v57 = vperm.slane %v923_v50, %v1838_v6 }
 0x1f6   : > { %v1028_v54 = vperm.slane %v893_v10, %v1882_v42 }
 0x1f8   : > { %v1029_v24 = vsel %vm959_vm2, %v1028_v54, %v1027_v18 }
 0x1f9   : > { %v1031_v47 = vsel %vm963_vm3, %v1030_v58, %v1029_v24 }
 0x1fc   : > { %v899_v55 = vpop.permute.xlu2 %898  ;;  %v875_v39 = vpop.permute.xlu1 %874 }
 0x1fd   : > { %v1032_v38 = vperm.slane %v899_v55, %v1905_v25  ;;  %v878_v26 = vpop.permute.xlu0 %877  ;;  %v1017_v19 = vperm.slane %v875_v39, %v1891_v37 }
 0x1fe   : > { %v1019_v1 = vperm.slane %v878_v26, %v1905_v25 }
 0x1ff   : > { %v1018_v56 = vsel %vm963_vm3, %v1017_v19, %v1016_v61  ;;  %v1033_v53 = vsel %vm967_vm4, %v1032_v38, %v1031_v47 }
 0x200   : > { %v1020_v40 = vsel %vm967_vm4, %v1019_v1, %v1018_v56 }
 0x201   : > { %v1067_v52 = vsel %vm1066_vm9, %v1020_v40, %v1065_v8  ;;  %v1049_v8 = vsel %vm947_vm0, %v1048_v5, %v1047_v57  ;;  %vm1157_vm0 = vcmask 257024  }
 0x202   : > { %v1069_v30 = vsel %vm1068_vm11, %v1033_v53, %v1067_v52 }
 0x204   : > { %v929_v49 = vpop.permute.xlu1 %928  ;;  %v920_v23 = vpop.permute.xlu2 %919 }
 0x205   : > { %v932_v12 = vpop.permute.xlu0 %931  ;;  %v1050_v9 = vperm.slane %v929_v49, %v1846_v13  ;;  %v1045_v59 = vperm.slane %v920_v23, %v1905_v25 }
 0x206   : > { %v1052_v20 = vperm.slane %v932_v12, %v1849_v0 }
 0x207   : > { %v1051_v22 = vsel %vm951_vm10, %v1050_v9, %v1049_v8 }
 0x208   : > { %v1053_v60 = vsel %vm955_vm1, %v1052_v20, %v1051_v22 }
 0x20c   : > { %v914_v48 = vpop.permute.xlu1 %913 }
 0x20d   : > { %v935_v16 = vpop.permute.xlu0 %934  ;;  %v1041_v34 = vperm.slane %v914_v48, %v1882_v42 }
 0x20e   : > { %v1054_v13 = vperm.slane %v935_v16, %v1882_v42 }
 0x20f   : > { %v1042_v6 = vsel %vm959_vm2, %v1041_v34, %v1040_v3 }
 0x210   : > { %v1055_v0 = vsel %vm959_vm2, %v1054_v13, %v1053_v60 }
 0x214   : > { %v917_v27 = vpop.permute.xlu1 %916 }
 0x215   : > { %v1043_v14 = vperm.slane %v917_v27, %v1891_v37  ;;  %v941_v50 = vpop.permute.xlu0 %940 }
 0x216   : > { %v1058_v17 = vperm.slane %v941_v50, %v1905_v25 }
 0x217   : > { %v1044_v63 = vsel %vm963_vm3, %v1043_v14, %v1042_v6 }
 0x218   : > { %v1046_v33 = vsel %vm967_vm4, %v1045_v59, %v1044_v63 }
 0x219   : > { %v1071_v28 = vsel %vm1070_vm12, %v1046_v33, %v1069_v30 }
 0x21c   : > { %v938_v10 = vpop.permute.xlu1 %937 }
 0x21d   : > { %v1056_v62 = vperm.slane %v938_v10, %v1891_v37  ;;  %v1282_v37 = vld [vmem:[%s2045_s3] sm:$0xff] }
 0x21e   : > { %1149 = vmatpush.bf16.msra.mxu1 %v1282_v37 }
 0x21f   : > { %v1057_v42 = vsel %vm963_vm3, %v1056_v62, %v1055_v0 }
 0x220   : > { %v1059_v43 = vsel %vm967_vm4, %v1058_v17, %v1057_v42 }
 0x221   : > { %v1073_v54 = vsel %vm1072_vm13, %v1059_v43, %v1071_v28 }
 0x222   : > { %v1074_v4 = vpack.c.b16 %v1073_v54, %v1073_v54 }
 0x224   : > { %1265 = vmatmul.msk.bf16.vlgmr.msra.gmra.mxu0 %vm1096_vm14, %v1074_v4 }
 0x2a1   : > { %v1113_v44 = vpop.f32.mrf.mxu0 }
 0x2a2   : > { %v1117_v25 = vpack.c.bf16 %v1113_v44, %v1113_v44 }
 0x2a4   : > { %1274 = vmatmul.msk.bf16.vlgmr.msra.gmra.mxu1 %vm1138_vm15, %v1117_v25 }
 0x2a9   : > { %v1115_v51 = vpop.f32.mrf.mxu0 }
 0x321   : > { %v1151_v21 = vpop.f32.mrf.mxu1 }
 0x322   : > { %v1152_v18 = vadd.f32 %v1327_v46, %v1151_v21 }
 0x324   : > { %1330 = vtanh.f32 %v1152_v18 }
 0x329   : > { %v1153_v58 = vpop.f32.mrf.mxu1 }
 0x32a   : > { %v1331_v55 = vpop.eup %1330 }
 0x32b   : > { %v1156_v39 = vpack.c.bf16 %v1331_v55, %v1331_v55 }
 0x32d   : > { %1158 = vst.msk [vmem:[%s228_s17] sm:$0xf] %vm1157_vm0, %v1156_v39 }
 0x32e   : > { %1359 = shalt.err (!%p1356_p3)
}
 0x32f   : > { %1284 = dma.vmem_to_hbm [thread:$0]  (%p1465_p5), %s1173_s23, 64, %s1175_s25, %s1160_s26  }
 0x330 PF: > { %p1290_p4 = scmp.ge.s32.totalorder %s1394_s21, 2  ;;  %s1186_s11 = sand.u32 1, %s1382_s18  }
 0x331   : > { %s1187_s12 = scalar_lea.sflag [#allocation3], %s1186_s11 }
 0x332   : > { %p1287_p7 = pnand %p1290_p4, %p1469_p6 }
 0x334   : > { %p1288_p8 = pneg %p1287_p7 }
 0x336   : > { %1377 = dma.done.wait (%p1288_p8), %s1187_s12, 64  }
 0x337   : > { %1379 = vsyncadd (%p1288_p8), %s1187_s12, 4294967232  ;;  %p15_p9 = scmp.ge.s32.totalorder %s1452_s24, 4   ;;  %s2050_s18 = smov %s1386_s19 }
 0x338   : > { %s2051_s19 = smov %s1390_s20  ;;  %s2052_s20 = smov %s1463_s27 }
 0x339   : > { %s2053_s21 = smov %s1452_s24  ;;  %17 = sbr.rel (!%p15_p9) target bundleno = 3 (0x3), region = 78 }
 0x33e   :  { %1193 = vsyncpa [#allocation3], 1 }
 0x33f   :  { %1195 = vsyncpa [#allocation3 + $0x1], 1 }

</bundles_post_ra>
